<compile_context>
chip_gen: v6e
topology: v6e:2x2x1
jax: 0.10.0
libtpu: 0.0.40
codegen_flags: <defaults>
</compile_context>

<pallas_src>
import functools

import jax
import jax.numpy as jnp
from jax.experimental import pallas as pl
from jax.experimental.pallas import tpu as pltpu


def _sublayer_connection_kernel(seed_ref, x_ref, gamma_ref, beta_ref,
                                w_ref, bias_ref, o_ref, *,
                                eps, dropout_rate, training, block_rows):
    x = x_ref[...].astype(jnp.float32)                       # (TM, D)
    tm, d = x.shape

    # --- LayerNorm (torch-style: unbiased std, divide by (std + eps)) ---
    mean = jnp.mean(x, axis=-1, keepdims=True)
    xc = x - mean
    std = jnp.sqrt(jnp.sum(xc * xc, axis=-1, keepdims=True) * (1.0 / (d - 1)))
    inv = 1.0 / (std + eps)                                   # one divide per row, reused
    gamma = gamma_ref[...].astype(jnp.float32)                # (1, D)
    beta = beta_ref[...].astype(jnp.float32)                  # (1, D)
    normed = gamma * (xc * inv) + beta

    # --- sublayer: dense projection on the MXU (bf16 operands, f32 accum) ---
    y = jnp.dot(normed.astype(jnp.bfloat16),
                w_ref[...].astype(jnp.bfloat16),
                preferred_element_type=jnp.float32)
    y = y + bias_ref[...].astype(jnp.float32)

    # --- dropout (inverted dropout, only in training mode) ---
    if training and dropout_rate > 0.0:
        # Stateless hash of global element index + seed -> uniform uint32 bits.
        rows = jax.lax.broadcasted_iota(jnp.int32, (tm, d), 0)
        cols = jax.lax.broadcasted_iota(jnp.int32, (tm, d), 1)
        gidx = (pl.program_id(0) * block_rows + rows) * d + cols
        h = (gidx + seed_ref[0] * jnp.int32(1000003)).astype(jnp.uint32)
        # murmur3-style finalizer (integer only; no float convert)
        h = h ^ (h >> 16)
        h = h * jnp.uint32(0x7FEB352D)
        h = h ^ (h >> 15)
        h = h * jnp.uint32(0x846CA68B)
        h = h ^ (h >> 16)
        # compare top 31 bits against an integer threshold: keep iff u >= p
        thresh31 = jnp.int32(min(int(round(dropout_rate * (1 << 31))), (1 << 31) - 1))
        keep = (h >> 1).astype(jnp.int32) >= thresh31
        inv_keep = jnp.float32(1.0 / (1.0 - dropout_rate))
        y = jnp.where(keep, y * inv_keep, 0.0)

    # --- residual connection ---
    o_ref[...] = (x + y).astype(o_ref.dtype)


def _pick_block_rows(n, block_rows):
    if n <= block_rows:
        return n                      # full extent: always a legal block
    return max(8, (min(block_rows, n) // 8) * 8)   # multiple of 8 (sublane)


def sublayer_connection(x, gamma, beta, w, bias, seed, *,
                        dropout_rate=0.1, training=False, eps=1e-6,
                        block_rows=256):
    """x: (B, S, D); gamma/beta/bias: (1, D); w: (D, D); seed: (1,) int32."""
    B, S, D = x.shape
    N = B * S
    x2 = x.reshape(N, D)

    TM = _pick_block_rows(N, block_rows)
    grid = (pl.cdiv(N, TM),)

    kernel = functools.partial(_sublayer_connection_kernel,
                               eps=eps, dropout_rate=dropout_rate,
                               training=training, block_rows=TM)

    # VMEM budget: double-buffered x + out tiles, resident weight/params, headroom.
    tile_bytes = TM * D * 4
    w_bytes = D * D * 4
    need = 2 * 2 * tile_bytes + 2 * (w_bytes + 3 * D * 4) + (4 << 20)
    vmem_limit = int(min(max(need, 32 << 20), 64 << 20))

    out = pl.pallas_call(
        kernel,
        out_shape=jax.ShapeDtypeStruct((N, D), x.dtype),
        grid=grid,
        in_specs=[
            pl.BlockSpec(memory_space=pltpu.MemorySpace.SMEM),   # seed (scalar)
            pl.BlockSpec((TM, D), lambda i: (i, 0)),             # x (row tiles)
            pl.BlockSpec((1, D), lambda i: (0, 0)),              # gamma (a_2)
            pl.BlockSpec((1, D), lambda i: (0, 0)),              # beta  (b_2)
            pl.BlockSpec((D, D), lambda i: (0, 0)),              # sublayer weight
            pl.BlockSpec((1, D), lambda i: (0, 0)),              # sublayer bias
        ],
        out_specs=pl.BlockSpec((TM, D), lambda i: (i, 0)),
        compiler_params=pltpu.CompilerParams(
            dimension_semantics=("parallel",),
            vmem_limit_bytes=vmem_limit),
    )(seed, x2, gamma, beta, w, bias)

    return out.reshape(B, S, D)


def _reference(x, gamma, beta, w, bias, eps=1e-6):
    """Pure-JAX reference for the eval (no-dropout) path (bf16 matmul operands
    to mirror the kernel's MXU dtype choice)."""
    d = x.shape[-1]
    mean = jnp.mean(x, axis=-1, keepdims=True)
    xc = x - mean
    std = jnp.sqrt(jnp.sum(xc * xc, axis=-1, keepdims=True) / (d - 1))
    inv = 1.0 / (std + eps)
    normed = gamma * (xc * inv) + beta
    y = jnp.dot(normed.astype(jnp.bfloat16), w.astype(jnp.bfloat16),
                preferred_element_type=jnp.float32) + bias
    return x + y


if __name__ == "__main__":
    key = jax.random.PRNGKey(0)
    k_x, k_w, k_b = jax.random.split(key, 3)

    B, S, D = 2, 128, 128        # batch, seq, hidden (hidden = lane-dense 128)
    dropout_rate = 0.1

    x = jax.random.normal(k_x, (B, S, D), dtype=jnp.float32)

    # LayerNorm params (as in __init__: ones / zeros).
    gamma = jnp.ones((1, D), dtype=jnp.float32)
    beta = jnp.zeros((1, D), dtype=jnp.float32)

    # Deterministic synthetic sublayer (Linear D->D) weights.
    # TODO(synk): the torch `sublayer` is an arbitrary callable; a Linear layer
    # is used here so the whole residual block fuses into one kernel.
    w = jax.random.normal(k_w, (D, D), dtype=jnp.float32) / jnp.sqrt(D)
    bias = jax.random.normal(k_b, (1, D), dtype=jnp.float32) * 0.01

    seed = jnp.array([0], dtype=jnp.int32)

    # Eval path (dropout is identity) — verify against pure-JAX reference.
    # block_rows=64 -> grid of 4 row tiles to exercise the pipelined path.
    out = sublayer_connection(x, gamma, beta, w, bias, seed,
                              dropout_rate=dropout_rate, training=False,
                              block_rows=64)
    out = jax.block_until_ready(out)
    ref = _reference(x, gamma, beta, w, bias)

    assert out.shape == x.shape and out.dtype == x.dtype
    assert jnp.allclose(out, ref, atol=2e-3, rtol=2e-3), "mismatch vs reference"

    # Training path (exercises in-kernel hashed dropout); run and sanity-check.
    out_train = sublayer_connection(x, gamma, beta, w, bias, seed,
                                    dropout_rate=dropout_rate, training=True,
                                    block_rows=64)
    out_train = jax.block_until_ready(out_train)
    assert out_train.shape == x.shape
    assert bool(jnp.isfinite(out_train).all())

    print("KERNEL_OK")
</pallas_src>

<mosaic_0001>
module attributes {stable_mosaic.version = 11 : i64} {
  func.func @_sublayer_connection_kernel(%arg0: i32, %arg1: memref<1xi32, #tpu.memory_space<smem>>, %arg2: memref<64x128xf32, #tpu.memory_space<vmem>>, %arg3: memref<1x128xf32, #tpu.memory_space<vmem>>, %arg4: memref<1x128xf32, #tpu.memory_space<vmem>>, %arg5: memref<128x128xf32, #tpu.memory_space<vmem>>, %arg6: memref<1x128xf32, #tpu.memory_space<vmem>>, %arg7: memref<64x128xf32, #tpu.memory_space<vmem>>) attributes {dimension_semantics = [#tpu.dimension_semantics<parallel>], iteration_bounds = array<i64: 4>, scalar_prefetch = 0 : i64, scratch_operands = 0 : i64, tpu.core_type = #tpu.core_type<tc>, window_params = [{transform_indices = @transform_0, window_bounds = array<i64: 1>}, {transform_indices = @transform_1, window_bounds = array<i64: 64, 128>}, {pipeline_mode = #tpu.pipeline_mode<synchronous>, transform_indices = @transform_2, window_bounds = array<i64: 1, 128>}, {pipeline_mode = #tpu.pipeline_mode<synchronous>, transform_indices = @transform_3, window_bounds = array<i64: 1, 128>}, {pipeline_mode = #tpu.pipeline_mode<synchronous>, transform_indices = @transform_4, window_bounds = array<i64: 128, 128>}, {pipeline_mode = #tpu.pipeline_mode<synchronous>, transform_indices = @transform_5, window_bounds = array<i64: 1, 128>}, {transform_indices = @transform_6, window_bounds = array<i64: 64, 128>}]} {
    %c0 = arith.constant 0 : index
    %c0_0 = arith.constant 0 : index
    %0 = vector.load %arg2[%c0, %c0_0] : memref<64x128xf32, #tpu.memory_space<vmem>>, vector<64x128xf32>
    %cst = arith.constant dense<0.000000e+00> : vector<64xf32>
    %1 = vector.multi_reduction <add>, %0, %cst [1] : vector<64x128xf32> to vector<64xf32>
    %2 = vector.shape_cast %1 : vector<64xf32> to vector<64x1xf32>
    %cst_1 = arith.constant 1.280000e+02 : f32
    %3 = vector.broadcast %cst_1 : f32 to vector<64x1xf32>
    %4 = arith.divf %2, %3 : vector<64x1xf32>
    %5 = vector.broadcast %4 : vector<64x1xf32> to vector<64x128xf32>
    %6 = arith.subf %0, %5 : vector<64x128xf32>
    %7 = arith.mulf %6, %6 : vector<64x128xf32>
    %cst_2 = arith.constant dense<0.000000e+00> : vector<64xf32>
    %8 = vector.multi_reduction <add>, %7, %cst_2 [1] : vector<64x128xf32> to vector<64xf32>
    %9 = vector.shape_cast %8 : vector<64xf32> to vector<64x1xf32>
    %cst_3 = arith.constant 0.00787401571 : f32
    %10 = vector.broadcast %cst_3 : f32 to vector<64x1xf32>
    %11 = arith.mulf %9, %10 : vector<64x1xf32>
    %12 = math.sqrt %11 : vector<64x1xf32>
    %cst_4 = arith.constant 9.99999997E-7 : f32
    %13 = vector.broadcast %cst_4 : f32 to vector<64x1xf32>
    %14 = arith.addf %12, %13 : vector<64x1xf32>
    %cst_5 = arith.constant 1.000000e+00 : f32
    %15 = vector.broadcast %cst_5 : f32 to vector<64x1xf32>
    %16 = arith.divf %15, %14 : vector<64x1xf32>
    %c0_6 = arith.constant 0 : index
    %c0_7 = arith.constant 0 : index
    %17 = vector.load %arg3[%c0_6, %c0_7] : memref<1x128xf32, #tpu.memory_space<vmem>>, vector<1x128xf32>
    %c0_8 = arith.constant 0 : index
    %c0_9 = arith.constant 0 : index
    %18 = vector.load %arg4[%c0_8, %c0_9] : memref<1x128xf32, #tpu.memory_space<vmem>>, vector<1x128xf32>
    %19 = vector.broadcast %16 : vector<64x1xf32> to vector<64x128xf32>
    %20 = arith.mulf %6, %19 : vector<64x128xf32>
    %21 = vector.broadcast %17 : vector<1x128xf32> to vector<64x128xf32>
    %22 = arith.mulf %21, %20 : vector<64x128xf32>
    %23 = vector.broadcast %18 : vector<1x128xf32> to vector<64x128xf32>
    %24 = arith.addf %22, %23 : vector<64x128xf32>
    %25 = arith.truncf %24 : vector<64x128xf32> to vector<64x128xbf16>
    %c0_10 = arith.constant 0 : index
    %c0_11 = arith.constant 0 : index
    %26 = vector.load %arg5[%c0_10, %c0_11] : memref<128x128xf32, #tpu.memory_space<vmem>>, vector<128x128xf32>
    %27 = arith.truncf %26 : vector<128x128xf32> to vector<128x128xbf16>
    %cst_12 = arith.constant dense<0.000000e+00> : vector<64x128xf32>
    %28 = tpu.matmul %25, %27, %cst_12 {dimension_numbers = #tpu.dot_dimension_numbers<[1], [0], [0], [1], [0, 0, 1, 1], [], []>} : vector<64x128xbf16>, vector<128x128xbf16>, vector<64x128xf32> -> vector<64x128xf32>
    %c0_13 = arith.constant 0 : index
    %c0_14 = arith.constant 0 : index
    %29 = vector.load %arg6[%c0_13, %c0_14] : memref<1x128xf32, #tpu.memory_space<vmem>>, vector<1x128xf32>
    %30 = vector.broadcast %29 : vector<1x128xf32> to vector<64x128xf32>
    %31 = arith.addf %28, %30 : vector<64x128xf32>
    %32 = arith.addf %0, %31 : vector<64x128xf32>
    %c0_15 = arith.constant 0 : index
    %c0_16 = arith.constant 0 : index
    %33 = vector.load %arg7[%c0_15, %c0_16] : memref<64x128xf32, #tpu.memory_space<vmem>>, vector<64x128xf32>
    tpu.vector_store %arg7[%c0_15, %c0_16], %32 {strides = array<i32>} : memref<64x128xf32, #tpu.memory_space<vmem>>, vector<64x128xf32>,
    return
  }
  func.func @transform_0(%arg0: i32) -> i32 {
    %c0_i32 = arith.constant 0 : i32
    %c0_i32_0 = arith.constant 0 : i32
    return %c0_i32 : i32
  }
  func.func @transform_1(%arg0: i32) -> (i32, i32) {
    %c0_i32 = arith.constant 0 : i32
    %c0_i32_0 = arith.constant 0 : i32
    return %arg0, %c0_i32 : i32, i32
  }
  func.func @transform_2(%arg0: i32) -> (i32, i32) {
    %c0_i32 = arith.constant 0 : i32
    %c0_i32_0 = arith.constant 0 : i32
    %c0_i32_1 = arith.constant 0 : i32
    return %c0_i32, %c0_i32_0 : i32, i32
  }
  func.func @transform_3(%arg0: i32) -> (i32, i32) {
    %c0_i32 = arith.constant 0 : i32
    %c0_i32_0 = arith.constant 0 : i32
    %c0_i32_1 = arith.constant 0 : i32
    return %c0_i32, %c0_i32_0 : i32, i32
  }
  func.func @transform_4(%arg0: i32) -> (i32, i32) {
    %c0_i32 = arith.constant 0 : i32
    %c0_i32_0 = arith.constant 0 : i32
    %c0_i32_1 = arith.constant 0 : i32
    return %c0_i32, %c0_i32_0 : i32, i32
  }
  func.func @transform_5(%arg0: i32) -> (i32, i32) {
    %c0_i32 = arith.constant 0 : i32
    %c0_i32_0 = arith.constant 0 : i32
    %c0_i32_1 = arith.constant 0 : i32
    return %c0_i32, %c0_i32_0 : i32, i32
  }
  func.func @transform_6(%arg0: i32) -> (i32, i32) {
    %c0_i32 = arith.constant 0 : i32
    %c0_i32_0 = arith.constant 0 : i32
    return %arg0, %c0_i32 : i32, i32
  }
}

</mosaic_0001>

<bundles_post_ra>
// kernel: tpu_custom_call.1
= control target key start
LH: loop header
LB: loop body
LE: loop exit
PB: predicated region body
PF: predicated region fallthrough
CT: control target
= control target key end

     0   :  { %12 = vsyncpa [#allocation4], 0  ;;  %s1323_s0 = inlined_call_operand.<no memory space> [shape: s32[1], index: 0, kind: input, shape index: {}]   ;;  %s1324_s1 = inlined_call_operand.hbm [shape: f32[256,128], index: 1, kind: input, shape index: {}]   ;;  %s1325_s2 = inlined_call_operand.vmem [shape: f32[1,128], index: 2, kind: input, shape index: {}]   ;;  %s1326_s3 = inlined_call_operand.vmem [shape: f32[1,128], index: 3, kind: input, shape index: {}]   ;;  %s1327_s4 = inlined_call_operand.hbm [shape: f32[128,128], index: 4, kind: input, shape index: {}]   ;;  %s1328_s5 = inlined_call_operand.vmem [shape: f32[1,128], index: 5, kind: input, shape index: {}]   ;;  %s1329_s6 = inlined_call_operand.hbm [shape: f32[256,128], index: 6, kind: output, shape index: {}]  }
   0x1   :  { %14 = vsyncpa [#allocation4 + $0x1], 0 }
   0x2   :  { %15 = vsyncpa [#allocation7], 0 }
   0x3   :  { %16 = vsyncpa [#allocation5], 0 }
   0x4   :  { %18 = vsyncpa [#allocation5 + $0x1], 0  ;;  %s1025_s0 = smov 0   ;;  %s1027_s21 = smov 0  }
   0x5   :  { %s1029_s22 = smov 0   ;;  %s1031_s23 = smov 0  }
   0x6 LB: > { %s1046_s24 = sadd.s32 4294967295, %s981_s23   ;;  %s693_s25 = sadd.s32 4294967294, %s981_s23   ;;  %s981_s23 = sphi %s1031_s23, %s1352_s23   ;;  %s977_s22 = sphi %s1029_s22, %s1351_s22   ;;  %s973_s21 = sphi %s1027_s21, %s1350_s21   ;;  %s969_s0 = sphi %s1025_s0, %s1349_s0  }
   0x7   : > { %p65_p0 = scmp.ne.s32.totalorder %s973_s21, %s969_s0  ;;  %p1330_p1 = scmp.eq.s32.totalorder %s1046_s24, 0 }
   0x8   : > { %p179_p3 = scmp.eq.s32.totalorder %s693_s25, 3  ;;  %p694_p5 = scmp.ge.s32.totalorder %s981_s23, 1 }
   0x9   : > { %p1055_p4 = por %p1330_p1, %p65_p0  ;;  %p186_p7 = scmp.lt.s32.totalorder %s981_s23, 5 }
   0xa   : > { %p1060_p6 = por %p179_p3, %p65_p0  ;;  %s983_s29 = smov [#allocation6]  }
   0xb   : > { %s1335_s26 = scalar_select %p1055_p4, 1, 0 }
   0xc   : > { %s1336_s27 = scalar_select %p1060_p6, 1, 0 }
   0xd   : > { %p1065_p8 = pnand %p694_p5, %p186_p7  ;;  %s207_s30 = sshll.u32 %s983_s29, 4  ;;  %s208_s30 = int_to_ptr.vmem [resolvable:$true] %s207_s30 }
   0xe   : > { %s1078_s8 = sadd.s32 1, %s981_s23   ;;  %s52_s9 = sadd.s32 1, %s977_s22 }
   0xf   : > { %s1337_s28 = scalar_select %p1065_p8, 1, 0 }
  0x10   : > { %p774_p9 = pneg %p1065_p8  ;;  %s49_s10 = ssub.s32 %s981_s23, %s1078_s8 }
  0x11   : > { %s870_s11 = scalar_lea.vmem %s208_s30, 2048  ;;  %p878_p3 = scmp.lt.s32.totalorder %s208_s30, %s208_s30 }
  0x12   : > { %p1073_p10 = pnand %p774_p9, %p1330_p1  ;;  %p871_p12 = scmp.ne.s32.totalorder %s208_s30, %s870_s11 }
  0x13   : > { %p879_p5 = scmp.lt.s32.totalorder %s870_s11, %s870_s11 }
  0x14   : > { %p861_p11 = pneg %p1073_p10 }
  0x15   : > { %p880_p7 = por %p879_p5, %p878_p3 }
  0x16   : > { %p873_p13 = pnand %p871_p12, %p861_p11 }
  0x18   : > { %p874_p0 = pneg %p873_p13 }
  0x1a   : > { %p881_p2 = pnand %p880_p7, %p874_p0 }
  0x1c   : > { %884 = shalt.err (!%p881_p2)
}
  0x1d   : > { %s1331_s12 = smov 128   ;;  %s985_s13 = smov 8  }
  0x1e   : > { %777 = dma.hbm_to_vmem [thread:$0]  (!%p1073_p10), %s1327_s4, 2048, %s208_s30, [#allocation7], %s1331_s12, %s1331_s12, %s985_s13  }
  0x1f   : > { %p50_p2 = scmp.eq.s32.totalorder %s49_s10, 0  ;;  %p59_p9 = scmp.ne.s32.totalorder %s977_s22, %s973_s21 }
  0x20   : > { %p60_p11 = scmp.eq.s32.totalorder %s981_s23, 0  ;;  %p787_p12 = scmp.lt.s32.totalorder %s981_s23, 4 }
  0x21   : > { %s1098_s16 = scalar_select %p50_p2, %s977_s22, %s52_s9  }
  0x22   : > { %p61_p13 = por %p60_p11, %p59_p9  ;;  %p1339_p0 = scmp.eq.s32.totalorder %s1046_s24, 3 }
  0x23   : > { %s224_s18 = sand.u32 1, %s977_s22   ;;  %s712_s19 = sshll.u32 %s981_s23, 10 }
  0x24   : > { %p1102_p3 = por %p1339_p0, %p59_p9  ;;  %s697_s20 = sshll.u32 %s224_s18, 6 }
  0x25   : > { %s1111_s7 = scalar_lea.hbm %s1324_s1, %s712_s19  ;;  %s228_s30 = scalar_lea.vmem [#allocation3], %s697_s20 }
  0x26   : > { %s1340_s17 = scalar_select %p1102_p3, 1, 0 }
  0x27   : > { %s235_s9 = sshll.u32 %s228_s30, 4  ;;  %p1113_p10 = pnand %p787_p12, %p61_p13  ;;  %s1117_s9 = int_to_ptr.vmem [resolvable:$true] %s235_s9 }
  0x28   : > { %s1119_s11 = scalar_lea.sflag [#allocation4], %s224_s18  ;;  %s885_s14 = scalar_lea.hbm %s1111_s7, 1024 }
  0x29   : > { %p886_p5 = scmp.ne.s32.totalorder %s1111_s7, %s885_s14  ;;  %p887_p7 = pneg %p1113_p10 }
  0x2a   : > { %s890_s20 = scalar_lea.hbm %s1324_s1, 4096  ;;  %p891_p11 = scmp.lt.s32.totalorder %s1111_s7, %s1324_s1 }
  0x2b   : > { %p888_p2 = pnand %p887_p7, %p886_p5  ;;  %p892_p12 = scmp.lt.s32.totalorder %s890_s20, %s885_s14 }
  0x2d   : > { %p889_p9 = pneg %p888_p2  ;;  %p893_p13 = por %p892_p12, %p891_p11 }
  0x2f   : > { %p894_p0 = pnand %p893_p13, %p889_p9 }
  0x31   : > { %897 = shalt.err (!%p894_p0)
}
  0x32   : > { %s898_s18 = scalar_lea.vmem %s1117_s9, 1024  ;;  %s986_s30 = smov [#allocation3]  }
  0x33   : > { %p899_p1 = scmp.ne.s32.totalorder %s1117_s9, %s898_s18  ;;  %s903_s12 = sshll.u32 %s986_s30, 4  ;;  %s904_s12 = int_to_ptr.vmem [resolvable:$false] %s903_s12 }
  0x34   : > { %s905_s15 = scalar_lea.vmem %s904_s12, 2048  ;;  %p906_p2 = scmp.lt.s32.totalorder %s1117_s9, %s904_s12 }
  0x35   : > { %p901_p6 = pnand %p899_p1, %p887_p7  ;;  %p907_p3 = scmp.lt.s32.totalorder %s905_s15, %s898_s18 }
  0x37   : > { %p902_p5 = pneg %p901_p6  ;;  %p908_p4 = por %p907_p3, %p906_p2 }
  0x39   : > { %p909_p8 = pnand %p908_p4, %p902_p5 }
  0x3b   : > { %912 = shalt.err (!%p909_p8)
}
  0x3c   : > { %s1342_s14 = smov 128   ;;  %p1343_p1 = scmp.ne.s32.totalorder %s1337_s28, 0 }
  0x3d   : > { %781 = dma.hbm_to_vmem [thread:$0]  (!%p1113_p10), %s1111_s7, 1024, %s1117_s9, %s1119_s11, %s1342_s14, %s1342_s14, %s985_s13  }
  0x3e   : > { %247 = sbr.rel (%p1343_p1) target bundleno = 631 (0x277), region = 44  ;;  %s1146_s19 = sand.u32 (!%p1343_p1), 1, %s973_s21  }
  0x3f   : > { %s701_s12 = sshll.u32 (!%p1343_p1), %s1146_s19, 6  ;;  %s250_s20 = scalar_lea.sflag (!%p1343_p1), [#allocation4], %s1146_s19 }
  0x40   : > { %s253_s10 = scalar_lea.vmem (!%p1343_p1), [#allocation3], %s701_s12  ;;  %p1344_p4 = scmp.ne.s32.totalorder (!%p1343_p1), %s1335_s26, 0 }
  0x43   : > { %956 = dma.done.wait (%p1344_p4), %s250_s20, 1024  }
  0x44   : > { %958 = vsyncadd (%p1344_p4), %s250_s20, 4294966272  ;;  %p1345_p6 = scmp.eq.s32.totalorder %s1046_s24, 0 }
  0x46   : > { %960 = dma.done.wait (%p1345_p6), [#allocation7], 2048   ;;  %p1346_p8 = pmov %p1345_p6 }
  0x47   : > { %v1160_v0 = vld [vmem:[%s253_s10] sm:$0xff]  ;;  %v1166_v2 = vld [vmem:[%s253_s10 + $0x8] sm:$0xff]  ;;  %v1172_v4 = vld [vmem:[%s253_s10 + $0x10] sm:$0xff]  ;;  %s285_s25 = scalar_lea.vmem [#allocation8], %s701_s12  ;;  %s713_s18 = sshll.u32 %s1046_s24, 10 }
  0x48   : > { %962 = vsyncadd (%p1346_p8), [#allocation7], 4294965248  ;;  %v1162_v1 = vld [vmem:[%s253_s10 + $0x20] sm:$0xff]  ;;  %297 = vadd.xlane.f32.xlu0 %v1160_v0  ;;  %v1168_v3 = vld [vmem:[%s253_s10 + $0x28] sm:$0xff]  ;;  %s610_s29 = sshll.u32 %s285_s25, 4  ;;  %s1280_s14 = scalar_lea.hbm %s1329_s6, %s713_s18  ;;  %s1274_s29 = int_to_ptr.vmem [resolvable:$true] %s610_s29 }
  0x49   : > { %305 = vadd.xlane.f32.xlu1 %v1162_v1  ;;  %v1174_v5 = vld [vmem:[%s253_s10 + $0x18] sm:$0xff]  ;;  %v1178_v6 = vld [vmem:[%s253_s10 + $0x30] sm:$0xff]  ;;  %v496_v43 = vld [vmem:[#allocation6 + $0x60] sm:$0xff]  ;;  %s597_s24 = scalar_lea.sflag [#allocation5], %s1146_s19  ;;  %s913_s12 = scalar_lea.vmem %s1274_s29, 1024 }
  0x4a   : > { %v1180_v7 = vld [vmem:[%s253_s10 + $0x38] sm:$0xff]  ;;  %v498_v40 = vld [vmem:[#allocation6 + $0x70] sm:$0xff]  ;;  %v497_v44 = vld [vmem:[#allocation6 + $0x68] sm:$0xff]  ;;  %p914_p3 = scmp.ne.s32.totalorder %s1274_s29, %s913_s12  ;;  %p1347_p10 = scmp.ne.s32.totalorder %s1340_s17, 0 }
  0x4b   : > { %v499_v41 = vld [vmem:[#allocation6 + $0x78] sm:$0xff]  ;;  %v506_v45 = vpack.c.bf16 %v497_v44, %v496_v43  ;;  %v494_v46 = vld [vmem:[#allocation6 + $0x50] sm:$0xff]  ;;  %v492_v49 = vld [vmem:[#allocation6 + $0x40] sm:$0xff]  ;;  %s987_s20 = smov [#allocation8]  }
  0x4c   : > { %299 = vadd.xlane.f32.xlu0 %v1166_v2  ;;  %v507_v42 = vpack.c.bf16 %v499_v41, %v498_v40  ;;  %v495_v47 = vld [vmem:[#allocation6 + $0x58] sm:$0xff]  ;;  %v493_v50 = vld [vmem:[#allocation6 + $0x48] sm:$0xff]  ;;  %v490_v52 = vld [vmem:[#allocation6 + $0x30] sm:$0xff]  ;;  %p915_p7 = pnand %p914_p3, %p1347_p10  ;;  %s917_s10 = sshll.u32 %s987_s20, 4  ;;  %s918_s10 = int_to_ptr.vmem [resolvable:$false] %s917_s10 }
  0x4d   : > { %307 = vadd.xlane.f32.xlu1 %v1168_v3  ;;  %v505_v48 = vpack.c.bf16 %v495_v47, %v494_v46  ;;  %v504_v51 = vpack.c.bf16 %v493_v50, %v492_v49  ;;  %v491_v53 = vld [vmem:[#allocation6 + $0x38] sm:$0xff]  ;;  %v488_v54 = vld [vmem:[#allocation6 + $0x20] sm:$0xff]  ;;  %v489_v56 = vld [vmem:[#allocation6 + $0x28] sm:$0xff]  ;;  %s919_s26 = scalar_lea.vmem %s918_s10, 2048  ;;  %p920_p11 = scmp.lt.s32.totalorder %s1274_s29, %s918_s10 }
  0x4e   : > { %726 = vmatprep.subr.bf16.mxu0 %v507_v42  ;;  %750 = vmatprep.subr.bf16.mxu1 %v507_v42  ;;  %v503_v55 = vpack.c.bf16 %v491_v53, %v490_v52  ;;  %v502_v57 = vpack.c.bf16 %v489_v56, %v488_v54  ;;  %v486_v58 = vld [vmem:[#allocation6 + $0x10] sm:$0xff]  ;;  %v487_v59 = vld [vmem:[#allocation6 + $0x18] sm:$0xff]  ;;  %v484_v61 = vld [vmem:[#allocation6] sm:$0xff]  ;;  %p916_p9 = pneg %p915_p7  ;;  %p921_p12 = scmp.lt.s32.totalorder %s919_s26, %s913_s12 }
  0x4f   : > { %727 = vmatpush3.bf16.msra.mxu0 %v507_v42  ;;  %758 = vmatpush3.bf16.msra.mxu1 %v507_v42  ;;  %v501_v60 = vpack.c.bf16 %v487_v59, %v486_v58  ;;  %v485_v62 = vld [vmem:[#allocation6 + $0x8] sm:$0xff] }
  0x50   : > { %301 = vadd.xlane.f32.xlu0 %v1172_v4  ;;  %728 = vmatprep.subr.bf16.mxu0 %v506_v45  ;;  %v500_v63 = vpack.c.bf16 %v485_v62, %v484_v61  ;;  %p922_p13 = por %p921_p12, %p920_p11 }
  0x51   : > { %303 = vadd.xlane.f32.xlu1 %v1174_v5  ;;  %751 = vmatprep.subr.bf16.mxu1 %v506_v45 }
  0x52   : > { %p923_p0 = pnand %p922_p13, %p916_p9 }
  0x53   : > { %729 = vmatpush3.bf16.msra.mxu0 %v506_v45  ;;  %759 = vmatpush3.bf16.msra.mxu1 %v506_v45 }
  0x54   : > { %309 = vadd.xlane.f32.xlu0 %v1178_v6  ;;  %730 = vmatprep.subr.bf16.mxu0 %v505_v48 }
  0x55   : > { %311 = vadd.xlane.f32.xlu1 %v1180_v7  ;;  %752 = vmatprep.subr.bf16.mxu1 %v505_v48 }
  0x57   : > { %731 = vmatpush3.bf16.msra.mxu0 %v505_v48  ;;  %760 = vmatpush3.bf16.msra.mxu1 %v505_v48 }
  0x58   : > { %732 = vmatprep.subr.bf16.mxu0 %v504_v51  ;;  %753 = vmatprep.subr.bf16.mxu1 %v504_v51 }
  0x5b   : > { %733 = vmatpush3.bf16.msra.mxu0 %v504_v51  ;;  %761 = vmatpush3.bf16.msra.mxu1 %v504_v51 }
  0x5c   : > { %734 = vmatprep.subr.bf16.mxu0 %v503_v55  ;;  %754 = vmatprep.subr.bf16.mxu1 %v503_v55 }
  0x5f   : > { %735 = vmatpush3.bf16.msra.mxu0 %v503_v55  ;;  %762 = vmatpush3.bf16.msra.mxu1 %v503_v55 }
  0x60   : > { %736 = vmatprep.subr.bf16.mxu0 %v502_v57  ;;  %755 = vmatprep.subr.bf16.mxu1 %v502_v57 }
  0x63   : > { %737 = vmatpush3.bf16.msra.mxu0 %v502_v57  ;;  %763 = vmatpush3.bf16.msra.mxu1 %v502_v57 }
  0x64   : > { %738 = vmatprep.subr.bf16.mxu0 %v501_v60  ;;  %756 = vmatprep.subr.bf16.mxu1 %v501_v60 }
  0x67   : > { %739 = vmatpush3.bf16.msra.mxu0 %v501_v60  ;;  %764 = vmatpush3.bf16.msra.mxu1 %v501_v60 }
  0x68   : > { %740 = vmatprep.subr.bf16.mxu0 %v500_v63  ;;  %757 = vmatprep.subr.bf16.mxu1 %v500_v63 }
  0x6b   : > { %741 = vmatpush3.bf16.msra.mxu0 %v500_v63  ;;  %765 = vmatpush3.bf16.msra.mxu1 %v500_v63 }
  0xd1   : > { %v298_v8 = vpop.xlane.xlu0 %297 }
  0xd2   : > { %v306_v9 = vpop.xlane.xlu1 %305  ;;  %v314_v10 = vmul.f32 0.0078125, %v298_v8 }
  0xd3   : > { %v318_v11 = vmul.f32 0.0078125, %v306_v9 }
  0xd4   : > { %v1185_v12 = vsub.f32 %v1160_v0, %v314_v10 }
  0xd5   : > { %v1188_v13 = vsub.f32 %v1162_v1, %v318_v11  ;;  %v300_v14 = vpop.xlane.xlu0 %299 }
  0xd6   : > { %v308_v15 = vpop.xlane.xlu1 %307  ;;  %v315_v16 = vmul.f32 0.0078125, %v300_v14  ;;  %v330_v17 = vmul.f32 %v1185_v12, %v1185_v12 }
  0xd7   : > { %v319_v18 = vmul.f32 0.0078125, %v308_v15  ;;  %v334_v21 = vmul.f32 %v1188_v13, %v1188_v13 }
  0xd8   : > { %v1193_v19 = vsub.f32 %v1166_v2, %v315_v16  ;;  %338 = vadd.xlane.f32.xlu0 %v330_v17 }
  0xd9   : > { %v1196_v20 = vsub.f32 %v1168_v3, %v319_v18  ;;  %v302_v22 = vpop.xlane.xlu0 %301 }
  0xda   : > { %v304_v23 = vpop.xlane.xlu1 %303  ;;  %v316_v24 = vmul.f32 0.0078125, %v302_v22  ;;  %v331_v25 = vmul.f32 %v1193_v19, %v1193_v19 }
  0xdb   : > { %v317_v26 = vmul.f32 0.0078125, %v304_v23  ;;  %v335_v29 = vmul.f32 %v1196_v20, %v1196_v20 }
  0xdc   : > { %v1203_v27 = vsub.f32 %v1172_v4, %v316_v24  ;;  %346 = vadd.xlane.f32.xlu0 %v334_v21  ;;  %340 = vadd.xlane.f32.xlu1 %v331_v25 }
  0xdd   : > { %v1206_v28 = vsub.f32 %v1174_v5, %v317_v26  ;;  %v310_v30 = vpop.xlane.xlu0 %309 }
  0xde   : > { %v312_v31 = vpop.xlane.xlu1 %311  ;;  %v320_v32 = vmul.f32 0.0078125, %v310_v30  ;;  %v332_v33 = vmul.f32 %v1203_v27, %v1203_v27 }
  0xdf   : > { %v321_v34 = vmul.f32 0.0078125, %v312_v31  ;;  %v333_v37 = vmul.f32 %v1206_v28, %v1206_v28 }
  0xe0   : > { %v1213_v35 = vsub.f32 %v1178_v6, %v320_v32  ;;  %348 = vadd.xlane.f32.xlu1 %v335_v29  ;;  %342 = vadd.xlane.f32.xlu0 %v332_v33 }
  0xe1   : > { %v1216_v36 = vsub.f32 %v1180_v7, %v321_v34 }
  0xe2   : > { %v336_v38 = vmul.f32 %v1213_v35, %v1213_v35 }
  0xe3   : > { %v337_v39 = vmul.f32 %v1216_v36, %v1216_v36 }
  0xe4   : > { %344 = vadd.xlane.f32.xlu1 %v333_v37  ;;  %350 = vadd.xlane.f32.xlu0 %v336_v38 }
  0xe8   : > { %352 = vadd.xlane.f32.xlu1 %v337_v39 }
 0x161   : > { %v339_v8 = vpop.xlane.xlu0 %338 }
 0x162   : > { %v354_v9 = vmul.f32 0.007874016, %v339_v8 }
 0x164   : > { %827 = vrsqrt.f32 %v354_v9  ;;  %vm364_vm0 = vcmp.eq.f32.partialorder %v354_v9, inf  ;;  %v367_v32 = vand.u32 2147483648, %v354_v9  ;;  %vm366_vm1 = vcmp.eq.f32.partialorder %v354_v9, 0.0 }
 0x165   : > { %v341_v10 = vpop.xlane.xlu1 %340  ;;  %v347_v11 = vpop.xlane.xlu0 %346 }
 0x166   : > { %v355_v14 = vmul.f32 0.007874016, %v341_v10  ;;  %v358_v15 = vmul.f32 0.007874016, %v347_v11 }
 0x168   : > { %829 = vrsqrt.f32 %v355_v14  ;;  %vm371_vm2 = vcmp.eq.f32.partialorder %v355_v14, inf  ;;  %vm373_vm3 = vcmp.eq.f32.partialorder %v355_v14, 0.0  ;;  %v374_v41 = vand.u32 2147483648, %v355_v14 }
 0x169   : > { %831 = vrsqrt.f32 %v358_v15  ;;  %v349_v16 = vpop.xlane.xlu1 %348  ;;  %v343_v17 = vpop.xlane.xlu0 %342  ;;  %vm392_vm4 = vcmp.eq.f32.partialorder %v358_v15, inf  ;;  %v395_v44 = vand.u32 2147483648, %v358_v15  ;;  %vm394_vm5 = vcmp.eq.f32.partialorder %v358_v15, 0.0 }
 0x16a   : > { %v359_v18 = vmul.f32 0.007874016, %v349_v16  ;;  %v356_v21 = vmul.f32 0.007874016, %v343_v17 }
 0x16c   : > { %833 = vrsqrt.f32 %v359_v18  ;;  %vm399_vm6 = vcmp.eq.f32.partialorder %v359_v18, inf  ;;  %vm401_vm7 = vcmp.eq.f32.partialorder %v359_v18, 0.0  ;;  %v402_v52 = vand.u32 2147483648, %v359_v18 }
 0x16d   : > { %835 = vrsqrt.f32 %v356_v21  ;;  %v345_v22 = vpop.xlane.xlu1 %344  ;;  %v351_v23 = vpop.xlane.xlu0 %350  ;;  %vm378_vm8 = vcmp.eq.f32.partialorder %v356_v21, inf  ;;  %v381_v56 = vand.u32 2147483648, %v356_v21  ;;  %vm380_vm9 = vcmp.eq.f32.partialorder %v356_v21, 0.0 }
 0x16e   : > { %v1224_v24 = vmul.f32 0.007874016, %v345_v22  ;;  %v1226_v25 = vmul.f32 0.007874016, %v351_v23 }
 0x170   : > { %837 = vrsqrt.f32 %v1224_v24  ;;  %vm385_vm10 = vcmp.eq.f32.partialorder %v1224_v24, inf  ;;  %vm387_vm11 = vcmp.eq.f32.partialorder %v1224_v24, 0.0  ;;  %vm406_vm12 = vcmp.eq.f32.partialorder %v1226_v25, inf }
 0x171   : > { %v828_v26 = vpop.eup %827  ;;  %839 = vrsqrt.f32 %v1226_v25  ;;  %v353_v29 = vpop.xlane.xlu1 %352  ;;  %vm408_vm13 = vcmp.eq.f32.partialorder %v1226_v25, 0.0 }
 0x172   : > { %v363_v30 = vmul.f32 %v828_v26, %v354_v9  ;;  %v1230_v31 = vmul.f32 0.007874016, %v353_v29 }
 0x174   : > { %v365_v33 = vsel %vm364_vm0, %v354_v9, %v363_v30  ;;  %841 = vrsqrt.f32 %v1230_v31  ;;  %v388_v9 = vand.u32 2147483648, %v1224_v24  ;;  %vm413_vm14 = vcmp.eq.f32.partialorder %v1230_v31, inf }
 0x175   : > { %v830_v34 = vpop.eup %829  ;;  %v368_v37 = vsel %vm366_vm1, %v367_v32, %v365_v33  ;;  %vm415_vm15 = vcmp.eq.f32.partialorder %v1230_v31, 0.0  ;;  %v704_v33 = vld [vmem:[%s1325_s2] ss:$0 sm:$0xff] }
 0x176   : > { %v832_v38 = vpop.eup %831  ;;  %v370_v39 = vmul.f32 %v830_v34, %v355_v14  ;;  %v418_v40 = vadd.f32 1e-06, %v368_v37 }
 0x177   : > { %v391_v42 = vmul.f32 %v832_v38, %v358_v15 }
 0x178   : > { %v372_v43 = vsel %vm371_vm2, %v355_v14, %v370_v39  ;;  %843 = vrcp.f32 %v418_v40  ;;  %v409_v14 = vand.u32 2147483648, %v1226_v25 }
 0x179   : > { %v834_v45 = vpop.eup %833  ;;  %v393_v46 = vsel %vm392_vm4, %v358_v15, %v391_v42  ;;  %v375_v47 = vsel %vm373_vm3, %v374_v41, %v372_v43 }
 0x17a   : > { %v836_v48 = vpop.eup %835  ;;  %v398_v49 = vmul.f32 %v834_v45, %v359_v18  ;;  %v419_v50 = vadd.f32 1e-06, %v375_v47  ;;  %v396_v51 = vsel %vm394_vm5, %v395_v44, %v393_v46 }
 0x17b   : > { %v377_v53 = vmul.f32 %v836_v48, %v356_v21  ;;  %v422_v54 = vadd.f32 1e-06, %v396_v51 }
 0x17c   : > { %v400_v55 = vsel %vm399_vm6, %v359_v18, %v398_v49  ;;  %845 = vrcp.f32 %v419_v50 }
 0x17d   : > { %v838_v57 = vpop.eup %837  ;;  %v379_v58 = vsel %vm378_vm8, %v356_v21, %v377_v53  ;;  %v403_v59 = vsel %vm401_vm7, %v402_v52, %v400_v55  ;;  %847 = vrcp.f32 %v422_v54 }
 0x17e   : > { %v840_v60 = vpop.eup %839  ;;  %v382_v61 = vsel %vm380_vm9, %v381_v56, %v379_v58  ;;  %v384_v62 = vmul.f32 %v838_v57, %v1224_v24  ;;  %v423_v63 = vadd.f32 1e-06, %v403_v59 }
 0x17f   : > { %v420_v8 = vadd.f32 1e-06, %v382_v61  ;;  %v405_v10 = vmul.f32 %v840_v60, %v1226_v25 }
 0x180   : > { %v386_v11 = vsel %vm385_vm10, %v1224_v24, %v384_v62  ;;  %849 = vrcp.f32 %v423_v63  ;;  %v416_v24 = vand.u32 2147483648, %v1230_v31 }
 0x181   : > { %v842_v15 = vpop.eup %841  ;;  %851 = vrcp.f32 %v420_v8  ;;  %v389_v16 = vsel %vm387_vm11, %v388_v9, %v386_v11  ;;  %v407_v17 = vsel %vm406_vm12, %v1226_v25, %v405_v10 }
 0x182   : > { %v421_v18 = vadd.f32 1e-06, %v389_v16  ;;  %v410_v21 = vsel %vm408_vm13, %v409_v14, %v407_v17  ;;  %v412_v22 = vmul.f32 %v842_v15, %v1230_v31 }
 0x183   : > { %v424_v23 = vadd.f32 1e-06, %v410_v21 }
 0x184   : > { %853 = vrcp.f32 %v421_v18  ;;  %v414_v26 = vsel %vm413_vm14, %v1230_v31, %v412_v22  ;;  %v705_v31 = vld [vmem:[%s1326_s3] ss:$0 sm:$0xff] }
 0x185   : > { %v844_v29 = vpop.eup %843  ;;  %855 = vrcp.f32 %v424_v23  ;;  %v417_v30 = vsel %vm415_vm15, %v416_v24, %v414_v26 }
 0x186   : > { %v425_v32 = vadd.f32 1e-06, %v417_v30  ;;  %v444_v25 = vmul.f32 %v844_v29, %v1185_v12 }
 0x188   : > { %857 = vrcp.f32 %v425_v32  ;;  %v458_v39 = vmul.f32 %v704_v33, %v444_v25 }
 0x189   : > { %v846_v34 = vpop.eup %845 }
 0x18a   : > { %v848_v37 = vpop.eup %847  ;;  %v445_v38 = vmul.f32 %v846_v34, %v1193_v19  ;;  %v472_v12 = vadd.f32 %v705_v31, %v458_v39 }
 0x18b   : > { %v448_v40 = vmul.f32 %v848_v37, %v1188_v13 }
 0x18c   : > { %v459_v41 = vmul.f32 %v704_v33, %v445_v38 }
 0x18d   : > { %v850_v42 = vpop.eup %849  ;;  %v462_v46 = vmul.f32 %v704_v33, %v448_v40 }
 0x18e   : > { %v852_v43 = vpop.eup %851  ;;  %v473_v44 = vadd.f32 %v705_v31, %v459_v41  ;;  %v449_v45 = vmul.f32 %v850_v42, %v1196_v20 }
 0x18f   : > { %v446_v47 = vmul.f32 %v852_v43, %v1203_v27  ;;  %v476_v51 = vadd.f32 %v705_v31, %v462_v46 }
 0x190   : > { %v480_v48 = vpack.c.bf16 %v473_v44, %v472_v12  ;;  %v463_v49 = vmul.f32 %v704_v33, %v449_v45 }
 0x191   : > { %v854_v19 = vpop.eup %853  ;;  %v460_v13 = vmul.f32 %v704_v33, %v446_v47 }
 0x192   : > { %v856_v50 = vpop.eup %855  ;;  %742 = vmatprep.mubr.bf16.mxu0 %v480_v48  ;;  %v477_v52 = vadd.f32 %v705_v31, %v463_v49  ;;  %v447_v53 = vmul.f32 %v854_v19, %v1206_v28  ;;  %v706_v28 = vld [vmem:[%s1328_s5] ss:$0 sm:$0xff] }
 0x193   : > { %v450_v54 = vmul.f32 %v856_v50, %v1213_v35  ;;  %v474_v20 = vadd.f32 %v705_v31, %v460_v13 }
 0x194   : > { %v482_v55 = vpack.c.bf16 %v477_v52, %v476_v51  ;;  %v461_v56 = vmul.f32 %v704_v33, %v447_v53 }
 0x195   : > { %v858_v57 = vpop.eup %857  ;;  %v464_v59 = vmul.f32 %v704_v33, %v450_v54 }
 0x196   : > { %746 = vmatprep.mubr.bf16.mxu1 %v482_v55  ;;  %v475_v58 = vadd.f32 %v705_v31, %v461_v56  ;;  %v451_v27 = vmul.f32 %v858_v57, %v1216_v36 }
 0x197   : > { %v478_v62 = vadd.f32 %v705_v31, %v464_v59 }
 0x198   : > { %v481_v60 = vpack.c.bf16 %v475_v58, %v474_v20  ;;  %v465_v61 = vmul.f32 %v704_v33, %v451_v27 }
 0x19a   : > { %743 = vmatmul.mubr.bf16.vlgmr.msra.gmra.mxu0 %v481_v60  ;;  %v479_v63 = vadd.f32 %v705_v31, %v465_v61 }
 0x19c   : > { %v483_v8 = vpack.c.bf16 %v479_v63, %v478_v62 }
 0x19e   : > { %747 = vmatmul.mubr.bf16.vlgmr.msra.gmra.mxu1 %v483_v8 }
 0x25a   : > { %v744_v35 = vpop.f32.mrf.mxu0 }
 0x25b   : > { %v558_v9 = vadd.f32 %v744_v35, %v706_v28 }
 0x25c   : > { %v549_v10 = vpop.f32.mrf.mxu0 }
 0x25d   : > { %v582_v11 = vadd.f32 %v558_v9, %v1172_v4  ;;  %v550_v14 = vadd.f32 %v706_v28, %v549_v10 }
 0x25e   : > { %v745_v36 = vpop.f32.mrf.mxu0  ;;  %v748_v15 = vpop.f32.mrf.mxu1 }
 0x25f   : > { %590 = vst [vmem:[%s285_s25 + $0x10] sm:$0xff] %v582_v11  ;;  %v580_v16 = vadd.f32 %v550_v14, %v1160_v0  ;;  %v561_v17 = vadd.f32 %v745_v36, %v706_v28  ;;  %v574_v18 = vadd.f32 %v748_v15, %v706_v28 }
 0x260   : > { %v552_v21 = vpop.f32.mrf.mxu0  ;;  %v565_v22 = vpop.f32.mrf.mxu1 }
 0x261   : > { %588 = vst [vmem:[%s285_s25] sm:$0xff] %v580_v16  ;;  %v583_v23 = vadd.f32 %v561_v17, %v1174_v5  ;;  %v586_v24 = vadd.f32 %v574_v18, %v1178_v6  ;;  %v553_v26 = vadd.f32 %v706_v28, %v552_v21  ;;  %v566_v4 = vadd.f32 %v706_v28, %v565_v22 }
 0x262   : > { %v749_v29 = vpop.f32.mrf.mxu1 }
 0x263   : > { %591 = vst [vmem:[%s285_s25 + $0x18] sm:$0xff] %v583_v23  ;;  %594 = vst [vmem:[%s285_s25 + $0x30] sm:$0xff] %v586_v24  ;;  %v581_v30 = vadd.f32 %v553_v26, %v1166_v2  ;;  %v584_v0 = vadd.f32 %v566_v4, %v1162_v1  ;;  %v577_v32 = vadd.f32 %v749_v29, %v706_v28 }
 0x264   : > { %v568_v25 = vpop.f32.mrf.mxu1 }
 0x265   : > { %589 = vst [vmem:[%s285_s25 + $0x8] sm:$0xff] %v581_v30  ;;  %592 = vst [vmem:[%s285_s25 + $0x20] sm:$0xff] %v584_v0  ;;  %v587_v5 = vadd.f32 %v577_v32, %v1180_v7  ;;  %v569_v6 = vadd.f32 %v706_v28, %v568_v25 }
 0x267   : > { %595 = vst [vmem:[%s285_s25 + $0x38] sm:$0xff] %v587_v5  ;;  %v585_v1 = vadd.f32 %v569_v6, %v1168_v3 }
 0x269   : > { %593 = vst [vmem:[%s285_s25 + $0x28] sm:$0xff] %v585_v1 }
 0x26a   : > { %926 = shalt.err (!%p923_p0)
}
 0x26b   : > { %s927_s28 = scalar_lea.hbm %s1280_s14, 1024  ;;  %s931_s9 = scalar_lea.hbm %s1329_s6, 4096 }
 0x26c   : > { %p928_p5 = scmp.ne.s32.totalorder %s1280_s14, %s927_s28  ;;  %p932_p4 = scmp.lt.s32.totalorder %s1280_s14, %s1329_s6 }
 0x26d   : > { %p933_p6 = scmp.lt.s32.totalorder %s931_s9, %s927_s28 }
 0x26e   : > { %p929_p2 = pnand %p928_p5, %p1347_p10 }
 0x26f   : > { %p934_p8 = por %p933_p6, %p932_p4 }
 0x270   : > { %p930_p1 = pneg %p929_p2 }
 0x272   : > { %p935_p3 = pnand %p934_p8, %p930_p1 }
 0x274   : > { %938 = shalt.err (!%p935_p3)
}
 0x275   : > { %s988_s18 = smov 128   ;;  %s989_s30 = smov 8  }
 0x276   : > { %772 = dma.vmem_to_hbm [thread:$0]  (%p1347_p10), %s1274_s29, 1024, %s1280_s14, %s597_s24, %s988_s18, %s988_s18, %s989_s30  }
 0x277 PF: > { %p789_p7 = scmp.ge.s32.totalorder %s981_s23, 2  ;;  %s625_s15 = sand.u32 1, %s969_s0  }
 0x278   : > { %p1348_p9 = scmp.ne.s32.totalorder %s1336_s27, 0  ;;  %s626_s12 = scalar_lea.sflag [#allocation5], %s625_s15 }
 0x27a   : > { %p783_p11 = pnand %p789_p7, %p1348_p9 }
 0x27c   : > { %p784_p12 = pneg %p783_p11 }
 0x27e   : > { %964 = dma.done.wait (%p784_p12), %s626_s12, 1024  }
 0x27f   : > { %966 = vsyncadd (%p784_p12), %s626_s12, 4294966272  ;;  %p21_p13 = scmp.ge.s32.totalorder %s1078_s8, 6   ;;  %s1349_s0 = smov %s973_s21 }
 0x280   : > { %s1350_s21 = smov %s977_s22  ;;  %s1351_s22 = smov %s1098_s16 }
 0x281   : > { %s1352_s23 = smov %s1078_s8  ;;  %23 = sbr.rel (!%p21_p13) target bundleno = 6 (0x6), region = 93 }
 0x286   :  { %631 = vsyncpa [#allocation4], 1 }
 0x287   :  { %633 = vsyncpa [#allocation4 + $0x1], 1 }
 0x288   :  { %634 = vsyncpa [#allocation7], 1 }
 0x289   :  { %635 = vsyncpa [#allocation5], 1 }
 0x28a   :  { %637 = vsyncpa [#allocation5 + $0x1], 1 }

</bundles_post_ra>
